<compile_context>
chip_gen: v6e
topology: v6e:2x2x1
jax: 0.10.0
libtpu: 0.0.40
codegen_flags: <defaults>
</compile_context>

<pallas_src>
import jax
import jax.numpy as jnp
from jax.experimental import pallas as pl
from jax.experimental.pallas import tpu as pltpu


# ---------------------------------------------------------------------------
# Tile selection
# ---------------------------------------------------------------------------
_TARGET_BLOCK_BYTES = 4 << 20     # ~4 MiB per (tr, tm) block of the big tensor
_LANE_CAP = 2048                  # max lanes per block
_VMEM_CAP_BYTES = 48 << 20        # stay well under v7x's 64 MiB physical VMEM
_VMEM_FLOOR_BYTES = 32 << 20      # default scoped limit on v6e/v7x; safe raise on v5e


def _round_down(x, unit):
    return (x // unit) * unit


def _largest_divisor_tile(dim, unit, cap):
    """Largest multiple of `unit` dividing `dim`, <= cap (requires dim % unit == 0)."""
    t = _round_down(min(cap, dim), unit)
    while t > unit:
        if dim % t == 0:
            return t
        t -= unit
    return unit


def _pick_tiles(rows, m, itemsize):
    """Choose (tr, tm, grid) for a (rows, m) row-major streaming kernel.

    tm always divides m (or equals the full, small m when m % 128 != 0), so
    lane tiles never straddle the array edge -- required for the streaming
    stats accumulation.  tr is a multiple of the sublane unit, capped by a
    per-block VMEM budget, and need NOT divide rows: the tail row block is
    partial, which is safe because every row is independent.
    """
    row_unit = max(8, 32 // itemsize)

    if m % 128 == 0:
        tm = _largest_divisor_tile(m, 128, _LANE_CAP)
    else:
        # TODO(synk): for deep Glow levels with H*W < 128, pack several (n, c)
        # planes along the lane axis instead of a sub-128-lane block.
        tm = m

    # Row tile from a per-block VMEM budget (prevents full-dim VMEM blowups)...
    budget_rows = max(row_unit,
                      _round_down(_TARGET_BLOCK_BYTES // (tm * itemsize), row_unit))
    # ...and keep >= 2 row tiles so the 'parallel' axis can shard across TCs (v7x).
    if rows > 2 * row_unit:
        budget_rows = min(budget_rows,
                          max(row_unit, _round_down(rows // 2, row_unit)))

    if rows < row_unit:
        tr = rows                                       # full dim (legal block)
    elif rows % row_unit == 0:
        tr = _largest_divisor_tile(rows, row_unit, budget_rows)
    else:
        tr = min(budget_rows, _round_down(rows, row_unit))  # partial tail block

    grid = (pl.cdiv(rows, tr), m // tm)
    return tr, tm, grid


def _vmem_limit(needed_bytes):
    return min(_VMEM_CAP_BYTES, max(_VMEM_FLOOR_BYTES, needed_bytes + (4 << 20)))


def _row_view(x):
    """NCHW -> (N*C, H*W): pure reshape, no data movement."""
    n, c, h, w = x.shape
    return x.reshape(n * c, h * w)


# ---------------------------------------------------------------------------
# Kernels
# ---------------------------------------------------------------------------
def _stats_kernel(x_ref, shift_ref, sum_ref, sumsq_ref):
    """Streaming per-row shifted sum / sum-of-squares across lane tiles.

    Accumulators stay lane-wide (tr, LW): the inner loop is pure VPU adds on
    128-lane aligned chunks; the final LW-lane reduce happens once, outside
    the kernel, on a tiny array.
    """
    @pl.when(pl.program_id(1) == 0)
    def _():
        sum_ref[...] = jnp.zeros_like(sum_ref)
        sumsq_ref[...] = jnp.zeros_like(sumsq_ref)

    shift = shift_ref[...]                              # (tr, 1) f32
    lw = sum_ref.shape[1]
    tm = x_ref.shape[1]

    if lw == 1:
        # Narrow / irregular lane dim: single lane tile, one cross-lane reduce.
        y = x_ref[...].astype(jnp.float32) - shift
        sum_ref[...] += jnp.sum(y, axis=1, keepdims=True)
        sumsq_ref[...] += jnp.sum(y * y, axis=1, keepdims=True)
    else:
        s = sum_ref[...]
        ss = sumsq_ref[...]
        for blk in range(tm // lw):                     # static unroll, VPU-only
            y = x_ref[:, blk * lw:(blk + 1) * lw].astype(jnp.float32) - shift
            s = s + y
            ss = ss + y * y
        sum_ref[...] = s
        sumsq_ref[...] = ss


def _actnorm_kernel(x_ref, loc_ref, scale_ref, out_ref):
    """out = scale * (x + loc) on one (tr, tm) tile; f32 math, downcast at store."""
    # TODO(synk): for bf16 inputs on v6e/v7x, compute in bf16 to halve vreg pressure.
    x = x_ref[...].astype(jnp.float32)
    out_ref[...] = (scale_ref[...] * (x + loc_ref[...])).astype(out_ref.dtype)


# ---------------------------------------------------------------------------
# Pallas wrappers
# ---------------------------------------------------------------------------
def _shifted_row_moments(x2d, shift_rows):
    """Per-row (sum(x - s), sum((x - s)^2)) over lanes, each (rows, LW) f32."""
    rows, m = x2d.shape
    itemsize = jnp.dtype(x2d.dtype).itemsize
    tr, tm, grid = _pick_tiles(rows, m, itemsize)
    lw = 128 if m % 128 == 0 else 1

    needed = 2 * tr * tm * itemsize + 4 * tr * lw * 4 + 2 * tr * 4
    cost = pl.CostEstimate(
        flops=4 * rows * m, transcendentals=0,
        bytes_accessed=rows * m * itemsize + 2 * rows * lw * 4 + rows * 4)

    return pl.pallas_call(
        _stats_kernel,
        out_shape=(
            jax.ShapeDtypeStruct((rows, lw), jnp.float32),
            jax.ShapeDtypeStruct((rows, lw), jnp.float32),
        ),
        grid_spec=pltpu.PrefetchScalarGridSpec(
            num_scalar_prefetch=0,
            grid=grid,
            in_specs=[
                pl.BlockSpec((tr, tm), lambda i, j: (i, j)),
                pl.BlockSpec((tr, 1), lambda i, j: (i, 0)),   # shift: resident
            ],
            out_specs=(
                pl.BlockSpec((tr, lw), lambda i, j: (i, 0)),  # resident accumulator
                pl.BlockSpec((tr, lw), lambda i, j: (i, 0)),  # resident accumulator
            ),
        ),
        compiler_params=pltpu.CompilerParams(
            dimension_semantics=("parallel", "arbitrary"),
            vmem_limit_bytes=_vmem_limit(needed)),
        cost_estimate=cost,
    )(x2d, shift_rows)


def _apply_actnorm(x2d, loc_rows, scale_rows, out_dtype):
    rows, m = x2d.shape
    itemsize = jnp.dtype(x2d.dtype).itemsize
    out_item = jnp.dtype(out_dtype).itemsize
    tr, tm, grid = _pick_tiles(rows, m, itemsize)

    needed = 2 * tr * tm * itemsize + 2 * tr * tm * out_item + 4 * tr * 4
    cost = pl.CostEstimate(
        flops=2 * rows * m, transcendentals=0,
        bytes_accessed=rows * m * (itemsize + out_item) + 2 * rows * 4)

    return pl.pallas_call(
        _actnorm_kernel,
        out_shape=jax.ShapeDtypeStruct((rows, m), out_dtype),
        grid_spec=pltpu.PrefetchScalarGridSpec(
            num_scalar_prefetch=0,
            grid=grid,
            in_specs=[
                pl.BlockSpec((tr, tm), lambda i, j: (i, j)),
                pl.BlockSpec((tr, 1), lambda i, j: (i, 0)),   # loc: resident across j
                pl.BlockSpec((tr, 1), lambda i, j: (i, 0)),   # scale: resident across j
            ],
            out_specs=pl.BlockSpec((tr, tm), lambda i, j: (i, j)),
        ),
        compiler_params=pltpu.CompilerParams(
            dimension_semantics=("parallel", "parallel"),
            vmem_limit_bytes=_vmem_limit(needed)),
        cost_estimate=cost,
    )(x2d, loc_rows, scale_rows)


def compute_batch_stats(x):
    """Per-channel (mean, std) over (N, H, W); std uses ddof=1 like torch.std()."""
    n, c, h, w = x.shape
    x2d = _row_view(x)
    cnt = n * h * w

    # Per-channel shift (~mean proxy) -> numerically stable one-pass variance.
    shift_c = x2d[:c, 0].astype(jnp.float32)                 # == x[0, :, 0, 0]
    shift_rows = jnp.broadcast_to(shift_c[None, :], (n, c)).reshape(n * c, 1)

    sums, sumsqs = _shifted_row_moments(x2d, shift_rows)
    row_sum = sums.sum(axis=1)                               # tiny (rows,) reduce
    row_sumsq = sumsqs.sum(axis=1)
    ch_sum = row_sum.reshape(n, c).sum(axis=0)               # sum(x - s_c)
    ch_sumsq = row_sumsq.reshape(n, c).sum(axis=0)           # sum((x - s_c)^2)

    mean = shift_c + ch_sum / cnt
    var = (ch_sumsq - ch_sum * ch_sum / cnt) / (cnt - 1)
    std = jnp.sqrt(jnp.maximum(var, 0.0))
    return mean, std


# ---------------------------------------------------------------------------
# Module
# ---------------------------------------------------------------------------
class ActNorm:
    """JAX/Pallas port of the Glow ActNorm module (forward + data-dependent init)."""

    def __init__(self, in_channel):
        self.in_channel = in_channel
        self.loc = jnp.zeros((1, in_channel, 1, 1), jnp.float32)
        self.scale = jnp.ones((1, in_channel, 1, 1), jnp.float32)
        # TODO(synk): Python-side flag + in-place param mutation; under jax.jit
        # the init branch is baked in at trace time (eager semantics only).
        self.initialized = False

    def initialize(self, inp):
        mean, std = compute_batch_stats(inp)
        c = self.in_channel
        self.loc = (-mean).reshape(1, c, 1, 1)
        self.scale = (1.0 / (std + 1e-6)).reshape(1, c, 1, 1)

    def forward(self, inp):
        n, c, h, w = inp.shape
        x2d = _row_view(inp)   # free reshape; reused by init + forward kernels

        if not self.initialized:
            self.initialize(inp)
            self.initialized = True

        # Per-(n, c)-row copies of the per-channel params: O(N*C) bytes.
        loc_rows = jnp.broadcast_to(
            self.loc.reshape(1, c), (n, c)).reshape(n * c, 1).astype(jnp.float32)
        scale_rows = jnp.broadcast_to(
            self.scale.reshape(1, c), (n, c)).reshape(n * c, 1).astype(jnp.float32)

        out2d = _apply_actnorm(x2d, loc_rows, scale_rows, inp.dtype)
        out = out2d.reshape(n, c, h, w)

        # O(C) work: kept out of the bandwidth-bound kernel.
        log_det = (h * w) * jnp.sum(jnp.log(jnp.abs(self.scale)))
        return out, log_det

    def reverse(self, out):
        # TODO(synk): reverse pass kept in plain JAX (not on the hot path here).
        return out / self.scale - self.loc


# ---------------------------------------------------------------------------
# Self-test
# ---------------------------------------------------------------------------
def _reference(x):
    n, c, h, w = x.shape
    flat = jnp.transpose(x, (1, 0, 2, 3)).reshape(c, -1)
    mean = flat.mean(axis=1).reshape(1, c, 1, 1)
    std = flat.std(axis=1, ddof=1).reshape(1, c, 1, 1)
    loc = -mean
    scale = 1.0 / (std + 1e-6)
    return scale * (x + loc), h * w * jnp.sum(jnp.log(jnp.abs(scale)))


if __name__ == "__main__":
    key = jax.random.PRNGKey(0)
    k1, k2 = jax.random.split(key)

    # --- main test: small canonical shape -------------------------------
    N, C, H, W = 2, 4, 16, 16
    x = jax.random.normal(k1, (N, C, H, W), jnp.float32) * 2.0 + 0.5

    module = ActNorm(C)
    out, log_det = module.forward(x)
    out = jax.block_until_ready(out)
    log_det = jax.block_until_ready(log_det)

    out_ref, logdet_ref = _reference(x)
    assert out.shape == x.shape and out.dtype == x.dtype
    assert jnp.allclose(out, out_ref, atol=1e-4, rtol=1e-4)
    assert jnp.allclose(log_det, logdet_ref, atol=1e-3, rtol=1e-4)

    # second call must reuse stored loc/scale (no re-init)
    out2, log_det2 = module.forward(x)
    out2 = jax.block_until_ready(out2)
    assert jnp.allclose(out2, out_ref, atol=1e-4, rtol=1e-4)
    assert jnp.allclose(log_det2, logdet_ref, atol=1e-3, rtol=1e-4)

    # --- second test: multi-tile grid + partial tail row block ----------
    # rows = 12 (not a multiple of 8) -> partial last row tile;
    # H*W = 2304 -> lane tile 1152, two lane tiles -> exercises accumulation.
    N2, C2, H2, W2 = 3, 4, 48, 48
    y = jax.random.normal(k2, (N2, C2, H2, W2), jnp.float32) * 3.0 + 5.0

    module2 = ActNorm(C2)
    out_b, log_det_b = module2.forward(y)
    out_b = jax.block_until_ready(out_b)
    log_det_b = jax.block_until_ready(log_det_b)

    out_b_ref, logdet_b_ref = _reference(y)
    assert out_b.shape == y.shape and out_b.dtype == y.dtype
    assert jnp.allclose(out_b, out_b_ref, atol=1e-4, rtol=1e-4)
    assert jnp.allclose(log_det_b, logdet_b_ref, atol=1e-3, rtol=1e-4)

    print("KERNEL_OK")
</pallas_src>

<mosaic_0001>
module attributes {stable_mosaic.version = 11 : i64} {
  func.func @_stats_kernel(%arg0: i32, %arg1: i32, %arg2: memref<8x256xf32, #tpu.memory_space<vmem>>, %arg3: memref<8x1xf32, #tpu.memory_space<vmem>>, %arg4: memref<8x128xf32, #tpu.memory_space<vmem>>, %arg5: memref<8x128xf32, #tpu.memory_space<vmem>>) attributes {dimension_semantics = [#tpu.dimension_semantics<parallel>, #tpu.dimension_semantics<arbitrary>], iteration_bounds = array<i64: 1, 1>, scalar_prefetch = 0 : i64, scratch_operands = 0 : i64, tpu.core_type = #tpu.core_type<tc>, window_params = [{transform_indices = @transform_0, window_bounds = array<i64: 8, 256>}, {transform_indices = @transform_1, window_bounds = array<i64: 8, 1>}, {transform_indices = @transform_2, window_bounds = array<i64: 8, 128>}, {transform_indices = @transform_3, window_bounds = array<i64: 8, 128>}]} {
    %c0_i32 = arith.constant 0 : i32
    %0 = arith.cmpi eq, %arg1, %c0_i32 : i32
    %1 = arith.extui %0 : i1 to i32
    %c0_i32_0 = arith.constant 0 : i32
    %2 = arith.cmpi ne, %1, %c0_i32_0 : i32
    scf.if %2 {
      %cst = arith.constant 0.000000e+00 : f32
      %20 = vector.broadcast %cst : f32 to vector<8x128xf32>
      %c0_13 = arith.constant 0 : index
      %c0_14 = arith.constant 0 : index
      %21 = vector.load %arg4[%c0_13, %c0_14] : memref<8x128xf32, #tpu.memory_space<vmem>>, vector<8x128xf32>
      tpu.vector_store %arg4[%c0_13, %c0_14], %20 {strides = array<i32>} : memref<8x128xf32, #tpu.memory_space<vmem>>, vector<8x128xf32>,
      %cst_15 = arith.constant 0.000000e+00 : f32
      %22 = vector.broadcast %cst_15 : f32 to vector<8x128xf32>
      %c0_16 = arith.constant 0 : index
      %c0_17 = arith.constant 0 : index
      %23 = vector.load %arg5[%c0_16, %c0_17] : memref<8x128xf32, #tpu.memory_space<vmem>>, vector<8x128xf32>
      tpu.vector_store %arg5[%c0_16, %c0_17], %22 {strides = array<i32>} : memref<8x128xf32, #tpu.memory_space<vmem>>, vector<8x128xf32>,
    } else {
    }
    %c0 = arith.constant 0 : index
    %c0_1 = arith.constant 0 : index
    %3 = vector.load %arg3[%c0, %c0_1] : memref<8x1xf32, #tpu.memory_space<vmem>>, vector<8x1xf32>
    %c0_2 = arith.constant 0 : index
    %c0_3 = arith.constant 0 : index
    %4 = vector.load %arg4[%c0_2, %c0_3] : memref<8x128xf32, #tpu.memory_space<vmem>>, vector<8x128xf32>
    %c0_4 = arith.constant 0 : index
    %c0_5 = arith.constant 0 : index
    %5 = vector.load %arg5[%c0_4, %c0_5] : memref<8x128xf32, #tpu.memory_space<vmem>>, vector<8x128xf32>
    %c0_6 = arith.constant 0 : index
    %c0_7 = arith.constant 0 : index
    %6 = vector.load %arg2[%c0_6, %c0_7] : memref<8x256xf32, #tpu.memory_space<vmem>>, vector<8x128xf32>
    %7 = vector.broadcast %3 : vector<8x1xf32> to vector<8x128xf32>
    %8 = arith.subf %6, %7 : vector<8x128xf32>
    %9 = arith.addf %4, %8 : vector<8x128xf32>
    %10 = arith.mulf %8, %8 : vector<8x128xf32>
    %11 = arith.addf %5, %10 : vector<8x128xf32>
    %c0_8 = arith.constant 0 : index
    %c128 = arith.constant 128 : index
    %12 = vector.load %arg2[%c0_8, %c128] : memref<8x256xf32, #tpu.memory_space<vmem>>, vector<8x128xf32>
    %13 = vector.broadcast %3 : vector<8x1xf32> to vector<8x128xf32>
    %14 = arith.subf %12, %13 : vector<8x128xf32>
    %15 = arith.addf %9, %14 : vector<8x128xf32>
    %16 = arith.mulf %14, %14 : vector<8x128xf32>
    %17 = arith.addf %11, %16 : vector<8x128xf32>
    %c0_9 = arith.constant 0 : index
    %c0_10 = arith.constant 0 : index
    %18 = vector.load %arg4[%c0_9, %c0_10] : memref<8x128xf32, #tpu.memory_space<vmem>>, vector<8x128xf32>
    tpu.vector_store %arg4[%c0_9, %c0_10], %15 {strides = array<i32>} : memref<8x128xf32, #tpu.memory_space<vmem>>, vector<8x128xf32>,
    %c0_11 = arith.constant 0 : index
    %c0_12 = arith.constant 0 : index
    %19 = vector.load %arg5[%c0_11, %c0_12] : memref<8x128xf32, #tpu.memory_space<vmem>>, vector<8x128xf32>
    tpu.vector_store %arg5[%c0_11, %c0_12], %17 {strides = array<i32>} : memref<8x128xf32, #tpu.memory_space<vmem>>, vector<8x128xf32>,
    return
  }
  func.func @transform_0(%arg0: i32, %arg1: i32) -> (i32, i32) {
    %c0_i32 = arith.constant 0 : i32
    return %arg0, %arg1 : i32, i32
  }
  func.func @transform_1(%arg0: i32, %arg1: i32) -> (i32, i32) {
    %c0_i32 = arith.constant 0 : i32
    %c0_i32_0 = arith.constant 0 : i32
    return %arg0, %c0_i32 : i32, i32
  }
  func.func @transform_2(%arg0: i32, %arg1: i32) -> (i32, i32) {
    %c0_i32 = arith.constant 0 : i32
    %c0_i32_0 = arith.constant 0 : i32
    return %arg0, %c0_i32 : i32, i32
  }
  func.func @transform_3(%arg0: i32, %arg1: i32) -> (i32, i32) {
    %c0_i32 = arith.constant 0 : i32
    %c0_i32_0 = arith.constant 0 : i32
    return %arg0, %c0_i32 : i32, i32
  }
}

</mosaic_0001>

<bundles_post_ra>
// kernel: tpu_custom_call.1
= control target key start
LH: loop header
LB: loop body
LE: loop exit
PB: predicated region body
PF: predicated region fallthrough
CT: control target
= control target key end

     0   :  { %9 = vsyncpa [#allocation3], 0  ;;  %s190_s0 = inlined_call_operand.hbm [shape: f32[8,256], index: 0, kind: input, shape index: {}]   ;;  %s191_s1 = inlined_call_operand.vmem [shape: f32[8,1], index: 1, kind: input, shape index: {}]   ;;  %s192_s2 = inlined_call_operand.hbm [shape: f32[8,128], index: 2, kind: output, shape index: {0}]   ;;  %s193_s3 = inlined_call_operand.hbm [shape: f32[8,128], index: 3, kind: output, shape index: {1}]  }
   0x1   :  { %10 = vsyncpa [#allocation4], 0 }
   0x2   :  { %11 = vsyncpa [#allocation7], 0  ;;  %s154_s12 = smov [#allocation2]  }
   0x3   :  { %s18_s13 = sshll.u32 %s154_s12, 4  ;;  %s19_s13 = int_to_ptr.vmem [resolvable:$true] %s18_s13 }
   0x4   :  { %s96_s14 = scalar_lea.vmem %s19_s13, 256  ;;  %p101_p1 = scmp.lt.s32.totalorder %s19_s13, %s19_s13 }
   0x5   :  { %p97_p0 = scmp.ne.s32.totalorder %s19_s13, %s96_s14  ;;  %p102_p2 = scmp.lt.s32.totalorder %s96_s14, %s96_s14 }
   0x7   :  { %p103_p3 = por %p102_p2, %p101_p1 }
   0x9   :  { %p104_p4 = pnand %p103_p3, %p97_p0 }
   0xb   :  { %107 = shalt.err (!%p104_p4)
}
   0xc   :  { %21 = dma.hbm_to_vmem [thread:$0]  %s190_s0, 256, %s19_s13, [#allocation3]  }
   0xd   :  { %148 = dma.done.wait [#allocation3], 256  }
   0xe   :  { %149 = vsyncadd [#allocation3], 4294967040  ;;  %v155_v0 = vmov 0   ;;  %v33_v1 = vld [vmem:[%s191_s1] sm:$0xff]  ;;  %v46_v3 = vld [vmem:[#allocation2 + $0x8] sm:$0xff]  ;;  %s156_s19 = smov [#allocation5]  }
   0xf   :  { %87 = vset.pattern.permute.xlu0 %v155_v0  ;;  %v36_v2 = vld [vmem:[#allocation2] sm:$0xff]  ;;  %s59_s20 = sshll.u32 %s156_s19, 4  ;;  %s157_s21 = smov [#allocation6]   ;;  %s60_s20 = int_to_ptr.vmem [resolvable:$true] %s59_s20 }
  0x10   :  { %39 = vperm.xlu0 %87, %v33_v1   ;;  %s69_s22 = sshll.u32 %s157_s21, 4  ;;  %s108_s0 = scalar_lea.vmem %s60_s20, 128  ;;  %s70_s22 = int_to_ptr.vmem [resolvable:$true] %s69_s22 }
  0x11   :  { %p109_p5 = scmp.ne.s32.totalorder %s60_s20, %s108_s0  ;;  %p113_p6 = scmp.lt.s32.totalorder %s60_s20, %s60_s20 }
  0x12   :  { %p114_p7 = scmp.lt.s32.totalorder %s108_s0, %s108_s0 }
  0x14   :  { %p115_p8 = por %p114_p7, %p113_p6 }
  0x16   :  { %p116_p9 = pnand %p115_p8, %p109_p5 }
  0x8b   :  { %v40_v4 = vpop.permute.xlu0 %39 }
  0x8c   :  { %v42_v5 = vsub.f32 %v36_v2, %v40_v4  ;;  %v47_v6 = vsub.f32 %v46_v3, %v40_v4 }
  0x8e   :  { %v44_v7 = vmul.f32 %v42_v5, %v42_v5  ;;  %v48_v8 = vadd.f32 %v47_v6, %v42_v5  ;;  %v49_v9 = vmul.f32 %v47_v6, %v47_v6 }
  0x90   :  { %v50_v10 = vadd.f32 %v49_v9, %v44_v7  ;;  %51 = vst [vmem:[#allocation5] sm:$0xff] %v48_v8 }
  0x91   :  { %119 = shalt.err (!%p116_p9)
}
  0x92   :  { %62 = dma.vmem_to_hbm [thread:$0]  %s60_s20, 128, %s192_s2, [#allocation4]   ;;  %52 = vst [vmem:[#allocation6] sm:$0xff] %v50_v10 }
  0x93   :  { %s128_s24 = scalar_lea.vmem %s70_s22, 128  ;;  %p133_p11 = scmp.lt.s32.totalorder %s70_s22, %s70_s22 }
  0x94   :  { %p129_p10 = scmp.ne.s32.totalorder %s70_s22, %s128_s24  ;;  %p134_p12 = scmp.lt.s32.totalorder %s128_s24, %s128_s24 }
  0x96   :  { %p135_p13 = por %p134_p12, %p133_p11 }
  0x98   :  { %p136_p0 = pnand %p135_p13, %p129_p10 }
  0x9a   :  { %139 = shalt.err (!%p136_p0)
}
  0x9b   :  { %72 = dma.vmem_to_hbm [thread:$0]  %s70_s22, 128, %s193_s3, [#allocation7]  }
  0x9c   :  { %150 = dma.done.wait [#allocation4], 128  }
  0x9d   :  { %151 = vsyncadd [#allocation4], 4294967168 }
  0x9e   :  { %152 = dma.done.wait [#allocation7], 128  }
  0x9f   :  { %153 = vsyncadd [#allocation7], 4294967168 }
  0xa0   :  { %79 = vsyncpa [#allocation3], 1 }
  0xa1   :  { %80 = vsyncpa [#allocation4], 1 }
  0xa2   :  { %81 = vsyncpa [#allocation7], 1 }

</bundles_post_ra>
